<compile_context>
chip_gen: v7x
topology: tpu7x:2x2x1
jax: 0.10.0
libtpu: 0.0.40
codegen_flags: <defaults>
</compile_context>

<pallas_src>
import math
import functools

import jax
import jax.numpy as jnp
from jax.experimental import pallas as pl
from jax.experimental.pallas import tpu as pltpu


def _attention_kernel(x_ref, wqkv_ref, bqkv_ref, wo_ref, bo_ref, *out_refs,
                      num_heads, head_dim, hidden_size, vis, approx_recip):
    if vis:
        out_ref, probs_ref = out_refs
    else:
        (out_ref,) = out_refs
        probs_ref = None

    x = x_ref[0]                               # (S, H), compute dtype
    mxu_dtype = x.dtype
    H = hidden_size
    hd = head_dim

    # --- fused QKV projection: one (S,H) x (H,3H) matmul, f32 accumulate.
    # The 1/sqrt(hd) score scale is already folded into the query weights/bias.
    qkv = jnp.dot(x, wqkv_ref[...], preferred_element_type=jnp.float32)
    qkv = qkv + bqkv_ref[...]                  # (S, 3H) f32

    # --- per-head attention core (statically unrolled; num_heads is small).
    ctx_parts = []
    for h in range(num_heads):
        q_h = qkv[:, h * hd:(h + 1) * hd]                  # (S, hd) f32
        k_h = qkv[:, H + h * hd:H + (h + 1) * hd]
        v_h = qkv[:, 2 * H + h * hd:2 * H + (h + 1) * hd]

        # scores = q @ k^T  (NT matmul: contract on head_dim, no transpose copy)
        scores = jax.lax.dot_general(
            q_h.astype(mxu_dtype), k_h.astype(mxu_dtype),
            dimension_numbers=(((1,), (1,)), ((), ())),
            preferred_element_type=jnp.float32)            # (S, S) f32

        # numerically-stable softmax in f32 (v5e-safe)
        m = jnp.max(scores, axis=-1, keepdims=True)
        e = jnp.exp(scores - m)
        denom = jnp.sum(e, axis=-1, keepdims=True)
        if approx_recip:
            probs = e * pl.reciprocal(denom, approx=True)  # EUP slot, off VALU
        else:
            probs = e / denom

        if probs_ref is not None:
            probs_ref[0, h] = probs.astype(probs_ref.dtype)

        ctx_h = jnp.dot(probs.astype(mxu_dtype), v_h.astype(mxu_dtype),
                        preferred_element_type=jnp.float32)  # (S, hd) f32
        ctx_parts.append(ctx_h.astype(mxu_dtype))

    # --- single output projection at full contraction depth K = H.
    ctx = jnp.concatenate(ctx_parts, axis=1)               # (S, H), compute dtype
    out = jnp.dot(ctx, wo_ref[...], preferred_element_type=jnp.float32)
    out = out + bo_ref[...]
    out_ref[0] = out.astype(out_ref.dtype)


def attention_pallas(hidden_states, params, *, num_heads, vis=True,
                     compute_dtype=jnp.bfloat16, approx_softmax=False,
                     probs_dtype=None):
    """hidden_states: (B, S, H).  params: dict of pre-transposed weights
    (w*: [H_in, H_out], b*: [1, H]) matching `x @ W + b`."""
    B, S, H = hidden_states.shape
    head_dim = H // num_heads
    assert num_heads * head_dim == H

    cd = jnp.dtype(compute_dtype)
    out_dtype = hidden_states.dtype
    if probs_dtype is None:
        probs_dtype = out_dtype

    x = hidden_states.astype(cd)

    # Fold the 1/sqrt(hd) score scale into the query weights/bias, then fuse
    # Q/K/V into a single (H, 3H) weight and (1, 3H) bias.
    scale = 1.0 / math.sqrt(head_dim)
    w_qkv = jnp.concatenate(
        [params["wq"] * scale, params["wk"], params["wv"]], axis=1).astype(cd)
    b_qkv = jnp.concatenate(
        [params["bq"] * scale, params["bk"], params["bv"]],
        axis=1).astype(jnp.float32)
    wo = params["wo"].astype(cd)                           # (H, H)
    bo = params["bo"].astype(jnp.float32)                  # (1, H)

    kernel = functools.partial(_attention_kernel,
                               num_heads=num_heads, head_dim=head_dim,
                               hidden_size=H, vis=vis,
                               approx_recip=approx_softmax)

    # Per-batch input block; all weights VMEM-resident (constant index_map).
    x_spec = pl.BlockSpec((1, S, H), lambda b: (b, 0, 0))
    wqkv_spec = pl.BlockSpec((H, 3 * H), lambda b: (0, 0))
    bqkv_spec = pl.BlockSpec((1, 3 * H), lambda b: (0, 0))
    wo_spec = pl.BlockSpec((H, H), lambda b: (0, 0))
    bo_spec = pl.BlockSpec((1, H), lambda b: (0, 0))

    out_shapes = [jax.ShapeDtypeStruct((B, S, H), out_dtype)]
    out_specs = [pl.BlockSpec((1, S, H), lambda b: (b, 0, 0))]
    if vis:
        out_shapes.append(
            jax.ShapeDtypeStruct((B, num_heads, S, S), probs_dtype))
        out_specs.append(
            pl.BlockSpec((1, num_heads, S, S), lambda b: (b, 0, 0, 0)))

    cds = cd.itemsize
    ods = jnp.dtype(out_dtype).itemsize
    pds = jnp.dtype(probs_dtype).itemsize

    # Advisory cost estimate so XLA schedules around the custom call sensibly.
    flops = B * (8 * S * H * H + 4 * num_heads * S * S * head_dim)
    transcendentals = B * num_heads * S * S
    bytes_accessed = (B * S * H * cds                      # x
                      + 4 * H * H * cds + 4 * H * 4        # weights + biases
                      + B * S * H * ods)                   # out
    if vis:
        bytes_accessed += B * num_heads * S * S * pds
    cost = pl.CostEstimate(flops=flops, transcendentals=transcendentals,
                           bytes_accessed=int(bytes_accessed))

    # VMEM budget: double-buffered blocks + f32 working set, clamped to the
    # chip's actual VMEM capacity (fallback = v7x's 64 MiB, the smallest).
    block_bytes = (S * H * cds
                   + H * 3 * H * cds + 3 * H * 4
                   + H * H * cds + H * 4
                   + S * H * ods)
    if vis:
        block_bytes += num_heads * S * S * pds
    working = (S * 3 * H * 4                # qkv f32
               + 6 * S * S * 4              # scores / exp / probs working set
               + 4 * S * head_dim * 4       # per-head q/k/v/ctx slices
               + S * H * cds)               # assembled ctx slab
    need = 2 * block_bytes + working
    try:
        vmem_cap = int(pltpu.get_tpu_info().vmem_capacity_bytes)
    except Exception:
        vmem_cap = 64 * 1024 * 1024
    vmem_bytes = int(min(max(need, 16 * 1024 * 1024), (3 * vmem_cap) // 4))

    outs = pl.pallas_call(
        kernel,
        out_shape=tuple(out_shapes),
        grid_spec=pltpu.PrefetchScalarGridSpec(
            num_scalar_prefetch=0,
            grid=(B,),
            in_specs=[x_spec, wqkv_spec, bqkv_spec, wo_spec, bo_spec],
            out_specs=tuple(out_specs),
        ),
        compiler_params=pltpu.CompilerParams(
            dimension_semantics=("parallel",),
            vmem_limit_bytes=vmem_bytes),
        cost_estimate=cost,
    )(x, w_qkv, b_qkv, wo, bo)

    if vis:
        out, probs = outs
        return out, probs
    return outs[0], None


def attention_reference(hidden_states, params, *, num_heads):
    """Pure-JAX reference mirroring the PyTorch forward (dropout = identity)."""
    B, S, H = hidden_states.shape
    hd = H // num_heads

    def lin(x, w, b):
        return x @ w + b

    q = lin(hidden_states, params["wq"], params["bq"])
    k = lin(hidden_states, params["wk"], params["bk"])
    v = lin(hidden_states, params["wv"], params["bv"])

    def split(t):
        return jnp.transpose(t.reshape(B, S, num_heads, hd), (0, 2, 1, 3))

    qh, kh, vh = split(q), split(k), split(v)
    scores = jnp.einsum("bhqd,bhkd->bhqk", qh, kh) / math.sqrt(hd)
    probs = jax.nn.softmax(scores, axis=-1)
    ctx = jnp.einsum("bhqk,bhkd->bhqd", probs, vh)
    ctx = jnp.transpose(ctx, (0, 2, 1, 3)).reshape(B, S, H)
    out = lin(ctx, params["wo"], params["bo"])
    return out, probs


if __name__ == "__main__":
    # Config: hidden_size=32, num_heads=4 -> head_dim=8; batch=2, seq=8.
    B, S, H, NH = 2, 8, 32, 4

    key = jax.random.PRNGKey(0)
    ks = jax.random.split(key, 9)
    scale = 0.02
    params = {
        # pre-transposed: [H_in, H_out]
        "wq": scale * jax.random.normal(ks[0], (H, H), jnp.float32),
        "bq": scale * jax.random.normal(ks[1], (1, H), jnp.float32),
        "wk": scale * jax.random.normal(ks[2], (H, H), jnp.float32),
        "bk": scale * jax.random.normal(ks[3], (1, H), jnp.float32),
        "wv": scale * jax.random.normal(ks[4], (H, H), jnp.float32),
        "bv": scale * jax.random.normal(ks[5], (1, H), jnp.float32),
        "wo": scale * jax.random.normal(ks[6], (H, H), jnp.float32),
        "bo": scale * jax.random.normal(ks[7], (1, H), jnp.float32),
    }
    x = jax.random.normal(ks[8], (B, S, H), jnp.float32)

    ref_out, ref_w = attention_reference(x, params, num_heads=NH)

    # 1) f32 MXU path, exact softmax divide -> tight tolerance.
    out, weights = attention_pallas(x, params, num_heads=NH, vis=True,
                                    compute_dtype=jnp.float32,
                                    approx_softmax=False)
    out = jax.block_until_ready(out)
    weights = jax.block_until_ready(weights)
    assert out.shape == (B, S, H)
    assert weights.shape == (B, NH, S, S)
    assert jnp.allclose(out, ref_out, atol=1e-5, rtol=1e-5)
    assert jnp.allclose(weights, ref_w, atol=1e-5, rtol=1e-5)

    # 2) bf16 MXU inputs, f32 accumulate, EUP approx reciprocal (fast path).
    out_bf, w_bf = attention_pallas(x, params, num_heads=NH, vis=True,
                                    compute_dtype=jnp.bfloat16,
                                    approx_softmax=True)
    out_bf = jax.block_until_ready(out_bf)
    w_bf = jax.block_until_ready(w_bf)
    assert jnp.allclose(out_bf, ref_out, atol=2e-2, rtol=2e-2)
    assert jnp.allclose(w_bf, ref_w, atol=2e-2, rtol=2e-2)

    # 3) vis=False perf path (no probs writeback).
    out_nv, w_nv = attention_pallas(x, params, num_heads=NH, vis=False,
                                    compute_dtype=jnp.bfloat16,
                                    approx_softmax=True)
    out_nv = jax.block_until_ready(out_nv)
    assert w_nv is None
    assert jnp.allclose(out_nv, ref_out, atol=2e-2, rtol=2e-2)

    print("KERNEL_OK")
</pallas_src>

<mosaic_0001>
module attributes {stable_mosaic.version = 11 : i64} {
  func.func @_attention_kernel(%arg0: i32, %arg1: memref<1x8x32xf32, #tpu.memory_space<vmem>>, %arg2: memref<32x96xf32, #tpu.memory_space<vmem>>, %arg3: memref<1x96xf32, #tpu.memory_space<vmem>>, %arg4: memref<32x32xf32, #tpu.memory_space<vmem>>, %arg5: memref<1x32xf32, #tpu.memory_space<vmem>>, %arg6: memref<1x8x32xf32, #tpu.memory_space<vmem>>, %arg7: memref<1x4x8x8xf32, #tpu.memory_space<vmem>>) attributes {dimension_semantics = [#tpu.dimension_semantics<parallel>], iteration_bounds = array<i64: 2>, scalar_prefetch = 0 : i64, scratch_operands = 0 : i64, tpu.core_type = #tpu.core_type<tc>, window_params = [{transform_indices = @transform_0, window_bounds = array<i64: 1, 8, 32>}, {pipeline_mode = #tpu.pipeline_mode<synchronous>, transform_indices = @transform_1, window_bounds = array<i64: 32, 96>}, {pipeline_mode = #tpu.pipeline_mode<synchronous>, transform_indices = @transform_2, window_bounds = array<i64: 1, 96>}, {pipeline_mode = #tpu.pipeline_mode<synchronous>, transform_indices = @transform_3, window_bounds = array<i64: 32, 32>}, {pipeline_mode = #tpu.pipeline_mode<synchronous>, transform_indices = @transform_4, window_bounds = array<i64: 1, 32>}, {transform_indices = @transform_5, window_bounds = array<i64: 1, 8, 32>}, {transform_indices = @transform_6, window_bounds = array<i64: 1, 4, 8, 8>}]} {
    %c0 = arith.constant 0 : index
    %c0_0 = arith.constant 0 : index
    %c0_1 = arith.constant 0 : index
    %0 = vector.load %arg1[%c0, %c0_0, %c0_1] : memref<1x8x32xf32, #tpu.memory_space<vmem>>, vector<1x8x32xf32>
    %1 = vector.shape_cast %0 : vector<1x8x32xf32> to vector<8x32xf32>
    %c0_2 = arith.constant 0 : index
    %c0_3 = arith.constant 0 : index
    %2 = vector.load %arg2[%c0_2, %c0_3] : memref<32x96xf32, #tpu.memory_space<vmem>>, vector<32x96xf32>
    %cst = arith.constant dense<0.000000e+00> : vector<8x96xf32>
    %3 = tpu.matmul %1, %2, %cst {dimension_numbers = #tpu.dot_dimension_numbers<[1], [0], [0], [1], [0, 0, 1, 1], [], []>} : vector<8x32xf32>, vector<32x96xf32>, vector<8x96xf32> -> vector<8x96xf32>
    %c0_4 = arith.constant 0 : index
    %c0_5 = arith.constant 0 : index
    %4 = vector.load %arg3[%c0_4, %c0_5] : memref<1x96xf32, #tpu.memory_space<vmem>>, vector<1x96xf32>
    %5 = vector.broadcast %4 : vector<1x96xf32> to vector<8x96xf32>
    %6 = arith.addf %3, %5 : vector<8x96xf32>
    %7 = vector.extract_strided_slice %6 {offsets = [0, 0], sizes = [8, 8], strides = [1, 1]} : vector<8x96xf32> to vector<8x8xf32>
    %8 = vector.extract_strided_slice %6 {offsets = [0, 32], sizes = [8, 8], strides = [1, 1]} : vector<8x96xf32> to vector<8x8xf32>
    %9 = vector.extract_strided_slice %6 {offsets = [0, 64], sizes = [8, 8], strides = [1, 1]} : vector<8x96xf32> to vector<8x8xf32>
    %cst_6 = arith.constant dense<0.000000e+00> : vector<8x8xf32>
    %10 = tpu.matmul %7, %8, %cst_6 {dimension_numbers = #tpu.dot_dimension_numbers<[1], [1], [0], [0], [0, 0, 1, 0], [], []>} : vector<8x8xf32>, vector<8x8xf32>, vector<8x8xf32> -> vector<8x8xf32>
    %cst_7 = arith.constant dense<0xFF800000> : vector<8xf32>
    %11 = vector.multi_reduction <maximumf>, %10, %cst_7 [1] : vector<8x8xf32> to vector<8xf32>
    %12 = vector.shape_cast %11 : vector<8xf32> to vector<8x1xf32>
    %13 = vector.broadcast %12 : vector<8x1xf32> to vector<8x8xf32>
    %14 = arith.subf %10, %13 : vector<8x8xf32>
    %15 = math.exp %14 : vector<8x8xf32>
    %cst_8 = arith.constant dense<0.000000e+00> : vector<8xf32>
    %16 = vector.multi_reduction <add>, %15, %cst_8 [1] : vector<8x8xf32> to vector<8xf32>
    %17 = vector.shape_cast %16 : vector<8xf32> to vector<8x1xf32>
    %18 = vector.broadcast %17 : vector<8x1xf32> to vector<8x8xf32>
    %19 = arith.divf %15, %18 : vector<8x8xf32>
    %c0_9 = arith.constant 0 : index
    %c0_10 = arith.constant 0 : index
    %c0_11 = arith.constant 0 : index
    %c0_12 = arith.constant 0 : index
    %20 = vector.load %arg7[%c0_9, %c0_10, %c0_11, %c0_12] : memref<1x4x8x8xf32, #tpu.memory_space<vmem>>, vector<1x1x8x8xf32>
    %21 = vector.shape_cast %20 : vector<1x1x8x8xf32> to vector<8x8xf32>
    %22 = vector.shape_cast %19 : vector<8x8xf32> to vector<1x1x8x8xf32>
    tpu.vector_store %arg7[%c0_9, %c0_10, %c0_11, %c0_12], %22 {strides = array<i32>} : memref<1x4x8x8xf32, #tpu.memory_space<vmem>>, vector<1x1x8x8xf32>,
    %cst_13 = arith.constant dense<0.000000e+00> : vector<8x8xf32>
    %23 = tpu.matmul %19, %9, %cst_13 {dimension_numbers = #tpu.dot_dimension_numbers<[1], [0], [0], [1], [0, 0, 1, 1], [], []>} : vector<8x8xf32>, vector<8x8xf32>, vector<8x8xf32> -> vector<8x8xf32>
    %24 = vector.extract_strided_slice %6 {offsets = [0, 8], sizes = [8, 8], strides = [1, 1]} : vector<8x96xf32> to vector<8x8xf32>
    %25 = vector.extract_strided_slice %6 {offsets = [0, 40], sizes = [8, 8], strides = [1, 1]} : vector<8x96xf32> to vector<8x8xf32>
    %26 = vector.extract_strided_slice %6 {offsets = [0, 72], sizes = [8, 8], strides = [1, 1]} : vector<8x96xf32> to vector<8x8xf32>
    %cst_14 = arith.constant dense<0.000000e+00> : vector<8x8xf32>
    %27 = tpu.matmul %24, %25, %cst_14 {dimension_numbers = #tpu.dot_dimension_numbers<[1], [1], [0], [0], [0, 0, 1, 0], [], []>} : vector<8x8xf32>, vector<8x8xf32>, vector<8x8xf32> -> vector<8x8xf32>
    %cst_15 = arith.constant dense<0xFF800000> : vector<8xf32>
    %28 = vector.multi_reduction <maximumf>, %27, %cst_15 [1] : vector<8x8xf32> to vector<8xf32>
    %29 = vector.shape_cast %28 : vector<8xf32> to vector<8x1xf32>
    %30 = vector.broadcast %29 : vector<8x1xf32> to vector<8x8xf32>
    %31 = arith.subf %27, %30 : vector<8x8xf32>
    %32 = math.exp %31 : vector<8x8xf32>
    %cst_16 = arith.constant dense<0.000000e+00> : vector<8xf32>
    %33 = vector.multi_reduction <add>, %32, %cst_16 [1] : vector<8x8xf32> to vector<8xf32>
    %34 = vector.shape_cast %33 : vector<8xf32> to vector<8x1xf32>
    %35 = vector.broadcast %34 : vector<8x1xf32> to vector<8x8xf32>
    %36 = arith.divf %32, %35 : vector<8x8xf32>
    %c0_17 = arith.constant 0 : index
    %c1 = arith.constant 1 : index
    %c0_18 = arith.constant 0 : index
    %c0_19 = arith.constant 0 : index
    %37 = vector.load %arg7[%c0_17, %c1, %c0_18, %c0_19] : memref<1x4x8x8xf32, #tpu.memory_space<vmem>>, vector<1x1x8x8xf32>
    %38 = vector.shape_cast %37 : vector<1x1x8x8xf32> to vector<8x8xf32>
    %39 = vector.shape_cast %36 : vector<8x8xf32> to vector<1x1x8x8xf32>
    tpu.vector_store %arg7[%c0_17, %c1, %c0_18, %c0_19], %39 {strides = array<i32>} : memref<1x4x8x8xf32, #tpu.memory_space<vmem>>, vector<1x1x8x8xf32>,
    %cst_20 = arith.constant dense<0.000000e+00> : vector<8x8xf32>
    %40 = tpu.matmul %36, %26, %cst_20 {dimension_numbers = #tpu.dot_dimension_numbers<[1], [0], [0], [1], [0, 0, 1, 1], [], []>} : vector<8x8xf32>, vector<8x8xf32>, vector<8x8xf32> -> vector<8x8xf32>
    %41 = vector.extract_strided_slice %6 {offsets = [0, 16], sizes = [8, 8], strides = [1, 1]} : vector<8x96xf32> to vector<8x8xf32>
    %42 = vector.extract_strided_slice %6 {offsets = [0, 48], sizes = [8, 8], strides = [1, 1]} : vector<8x96xf32> to vector<8x8xf32>
    %43 = vector.extract_strided_slice %6 {offsets = [0, 80], sizes = [8, 8], strides = [1, 1]} : vector<8x96xf32> to vector<8x8xf32>
    %cst_21 = arith.constant dense<0.000000e+00> : vector<8x8xf32>
    %44 = tpu.matmul %41, %42, %cst_21 {dimension_numbers = #tpu.dot_dimension_numbers<[1], [1], [0], [0], [0, 0, 1, 0], [], []>} : vector<8x8xf32>, vector<8x8xf32>, vector<8x8xf32> -> vector<8x8xf32>
    %cst_22 = arith.constant dense<0xFF800000> : vector<8xf32>
    %45 = vector.multi_reduction <maximumf>, %44, %cst_22 [1] : vector<8x8xf32> to vector<8xf32>
    %46 = vector.shape_cast %45 : vector<8xf32> to vector<8x1xf32>
    %47 = vector.broadcast %46 : vector<8x1xf32> to vector<8x8xf32>
    %48 = arith.subf %44, %47 : vector<8x8xf32>
    %49 = math.exp %48 : vector<8x8xf32>
    %cst_23 = arith.constant dense<0.000000e+00> : vector<8xf32>
    %50 = vector.multi_reduction <add>, %49, %cst_23 [1] : vector<8x8xf32> to vector<8xf32>
    %51 = vector.shape_cast %50 : vector<8xf32> to vector<8x1xf32>
    %52 = vector.broadcast %51 : vector<8x1xf32> to vector<8x8xf32>
    %53 = arith.divf %49, %52 : vector<8x8xf32>
    %c0_24 = arith.constant 0 : index
    %c2 = arith.constant 2 : index
    %c0_25 = arith.constant 0 : index
    %c0_26 = arith.constant 0 : index
    %54 = vector.load %arg7[%c0_24, %c2, %c0_25, %c0_26] : memref<1x4x8x8xf32, #tpu.memory_space<vmem>>, vector<1x1x8x8xf32>
    %55 = vector.shape_cast %54 : vector<1x1x8x8xf32> to vector<8x8xf32>
    %56 = vector.shape_cast %53 : vector<8x8xf32> to vector<1x1x8x8xf32>
    tpu.vector_store %arg7[%c0_24, %c2, %c0_25, %c0_26], %56 {strides = array<i32>} : memref<1x4x8x8xf32, #tpu.memory_space<vmem>>, vector<1x1x8x8xf32>,
    %cst_27 = arith.constant dense<0.000000e+00> : vector<8x8xf32>
    %57 = tpu.matmul %53, %43, %cst_27 {dimension_numbers = #tpu.dot_dimension_numbers<[1], [0], [0], [1], [0, 0, 1, 1], [], []>} : vector<8x8xf32>, vector<8x8xf32>, vector<8x8xf32> -> vector<8x8xf32>
    %58 = vector.extract_strided_slice %6 {offsets = [0, 24], sizes = [8, 8], strides = [1, 1]} : vector<8x96xf32> to vector<8x8xf32>
    %59 = vector.extract_strided_slice %6 {offsets = [0, 56], sizes = [8, 8], strides = [1, 1]} : vector<8x96xf32> to vector<8x8xf32>
    %60 = vector.extract_strided_slice %6 {offsets = [0, 88], sizes = [8, 8], strides = [1, 1]} : vector<8x96xf32> to vector<8x8xf32>
    %cst_28 = arith.constant dense<0.000000e+00> : vector<8x8xf32>
    %61 = tpu.matmul %58, %59, %cst_28 {dimension_numbers = #tpu.dot_dimension_numbers<[1], [1], [0], [0], [0, 0, 1, 0], [], []>} : vector<8x8xf32>, vector<8x8xf32>, vector<8x8xf32> -> vector<8x8xf32>
    %cst_29 = arith.constant dense<0xFF800000> : vector<8xf32>
    %62 = vector.multi_reduction <maximumf>, %61, %cst_29 [1] : vector<8x8xf32> to vector<8xf32>
    %63 = vector.shape_cast %62 : vector<8xf32> to vector<8x1xf32>
    %64 = vector.broadcast %63 : vector<8x1xf32> to vector<8x8xf32>
    %65 = arith.subf %61, %64 : vector<8x8xf32>
    %66 = math.exp %65 : vector<8x8xf32>
    %cst_30 = arith.constant dense<0.000000e+00> : vector<8xf32>
    %67 = vector.multi_reduction <add>, %66, %cst_30 [1] : vector<8x8xf32> to vector<8xf32>
    %68 = vector.shape_cast %67 : vector<8xf32> to vector<8x1xf32>
    %69 = vector.broadcast %68 : vector<8x1xf32> to vector<8x8xf32>
    %70 = arith.divf %66, %69 : vector<8x8xf32>
    %c0_31 = arith.constant 0 : index
    %c3 = arith.constant 3 : index
    %c0_32 = arith.constant 0 : index
    %c0_33 = arith.constant 0 : index
    %71 = vector.load %arg7[%c0_31, %c3, %c0_32, %c0_33] : memref<1x4x8x8xf32, #tpu.memory_space<vmem>>, vector<1x1x8x8xf32>
    %72 = vector.shape_cast %71 : vector<1x1x8x8xf32> to vector<8x8xf32>
    %73 = vector.shape_cast %70 : vector<8x8xf32> to vector<1x1x8x8xf32>
    tpu.vector_store %arg7[%c0_31, %c3, %c0_32, %c0_33], %73 {strides = array<i32>} : memref<1x4x8x8xf32, #tpu.memory_space<vmem>>, vector<1x1x8x8xf32>,
    %cst_34 = arith.constant dense<0.000000e+00> : vector<8x8xf32>
    %74 = tpu.matmul %70, %60, %cst_34 {dimension_numbers = #tpu.dot_dimension_numbers<[1], [0], [0], [1], [0, 0, 1, 1], [], []>} : vector<8x8xf32>, vector<8x8xf32>, vector<8x8xf32> -> vector<8x8xf32>
    %75 = tpu.concatenate %23, %40, %57, %74 in 1 : vector<8x8xf32>, vector<8x8xf32>, vector<8x8xf32>, vector<8x8xf32> -> vector<8x32xf32>
    %c0_35 = arith.constant 0 : index
    %c0_36 = arith.constant 0 : index
    %76 = vector.load %arg4[%c0_35, %c0_36] : memref<32x32xf32, #tpu.memory_space<vmem>>, vector<32x32xf32>
    %cst_37 = arith.constant dense<0.000000e+00> : vector<8x32xf32>
    %77 = tpu.matmul %75, %76, %cst_37 {dimension_numbers = #tpu.dot_dimension_numbers<[1], [0], [0], [1], [0, 0, 1, 1], [], []>} : vector<8x32xf32>, vector<32x32xf32>, vector<8x32xf32> -> vector<8x32xf32>
    %c0_38 = arith.constant 0 : index
    %c0_39 = arith.constant 0 : index
    %78 = vector.load %arg5[%c0_38, %c0_39] : memref<1x32xf32, #tpu.memory_space<vmem>>, vector<1x32xf32>
    %79 = vector.broadcast %78 : vector<1x32xf32> to vector<8x32xf32>
    %80 = arith.addf %77, %79 : vector<8x32xf32>
    %c0_40 = arith.constant 0 : index
    %c0_41 = arith.constant 0 : index
    %c0_42 = arith.constant 0 : index
    %81 = vector.load %arg6[%c0_40, %c0_41, %c0_42] : memref<1x8x32xf32, #tpu.memory_space<vmem>>, vector<1x8x32xf32>
    %82 = vector.shape_cast %81 : vector<1x8x32xf32> to vector<8x32xf32>
    %83 = vector.shape_cast %80 : vector<8x32xf32> to vector<1x8x32xf32>
    tpu.vector_store %arg6[%c0_40, %c0_41, %c0_42], %83 {strides = array<i32>} : memref<1x8x32xf32, #tpu.memory_space<vmem>>, vector<1x8x32xf32>,
    return
  }
  func.func @transform_0(%arg0: i32) -> (i32, i32, i32) {
    %c0_i32 = arith.constant 0 : i32
    %c0_i32_0 = arith.constant 0 : i32
    %c0_i32_1 = arith.constant 0 : i32
    return %arg0, %c0_i32, %c0_i32_0 : i32, i32, i32
  }
  func.func @transform_1(%arg0: i32) -> (i32, i32) {
    %c0_i32 = arith.constant 0 : i32
    %c0_i32_0 = arith.constant 0 : i32
    %c0_i32_1 = arith.constant 0 : i32
    return %c0_i32, %c0_i32_0 : i32, i32
  }
  func.func @transform_2(%arg0: i32) -> (i32, i32) {
    %c0_i32 = arith.constant 0 : i32
    %c0_i32_0 = arith.constant 0 : i32
    %c0_i32_1 = arith.constant 0 : i32
    return %c0_i32, %c0_i32_0 : i32, i32
  }
  func.func @transform_3(%arg0: i32) -> (i32, i32) {
    %c0_i32 = arith.constant 0 : i32
    %c0_i32_0 = arith.constant 0 : i32
    %c0_i32_1 = arith.constant 0 : i32
    return %c0_i32, %c0_i32_0 : i32, i32
  }
  func.func @transform_4(%arg0: i32) -> (i32, i32) {
    %c0_i32 = arith.constant 0 : i32
    %c0_i32_0 = arith.constant 0 : i32
    %c0_i32_1 = arith.constant 0 : i32
    return %c0_i32, %c0_i32_0 : i32, i32
  }
  func.func @transform_5(%arg0: i32) -> (i32, i32, i32) {
    %c0_i32 = arith.constant 0 : i32
    %c0_i32_0 = arith.constant 0 : i32
    %c0_i32_1 = arith.constant 0 : i32
    return %arg0, %c0_i32, %c0_i32_0 : i32, i32, i32
  }
  func.func @transform_6(%arg0: i32) -> (i32, i32, i32, i32) {
    %c0_i32 = arith.constant 0 : i32
    %c0_i32_0 = arith.constant 0 : i32
    %c0_i32_1 = arith.constant 0 : i32
    %c0_i32_2 = arith.constant 0 : i32
    return %arg0, %c0_i32, %c0_i32_0, %c0_i32_1 : i32, i32, i32, i32
  }
}

</mosaic_0001>

<bundles_post_ra>
// kernel: tpu_custom_call.1
= control target key start
LH: loop header
LB: loop body
LE: loop exit
PB: predicated region body
PF: predicated region fallthrough
CT: control target
= control target key end

     0   :  { %12 = vsyncpa [#allocation3], 0  ;;  %s2174_s0 = inlined_call_operand.hbm [shape: f32[2,8,32], index: 0, kind: input, shape index: {}]   ;;  %s2175_s1 = inlined_call_operand.hbm [shape: f32[32,96], index: 1, kind: input, shape index: {}]   ;;  %s2176_s2 = inlined_call_operand.vmem [shape: f32[1,96], index: 2, kind: input, shape index: {}]   ;;  %s2177_s3 = inlined_call_operand.hbm [shape: f32[32,32], index: 3, kind: input, shape index: {}]   ;;  %s2178_s4 = inlined_call_operand.vmem [shape: f32[1,32], index: 4, kind: input, shape index: {}]   ;;  %s2179_s5 = inlined_call_operand.hbm [shape: f32[2,8,32], index: 5, kind: output, shape index: {0}]   ;;  %s2180_s6 = inlined_call_operand.hbm [shape: f32[2,4,8,8], index: 6, kind: output, shape index: {1}]  }
   0x1   :  { %14 = vsyncpa [#allocation3 + $0x1], 0 }
   0x2   :  { %15 = vsyncpa [#allocation6], 0 }
   0x3   :  { %16 = vsyncpa [#allocation4], 0 }
   0x4   :  { %18 = vsyncpa [#allocation4 + $0x1], 0 }
   0x5   :  { %19 = vsyncpa [#allocation10], 0 }
   0x6   :  { %21 = vsyncpa [#allocation10 + $0x1], 0  ;;  %s1816_s21 = smov 0   ;;  %s1818_s22 = smov 0  }
   0x7   :  { %s1820_s23 = smov 0   ;;  %s1822_s24 = smov 0  }
   0x8 LB: > { %s1837_s25 = sadd.s32 4294967295, %s1754_s24   ;;  %s1318_s26 = sadd.s32 4294967294, %s1754_s24   ;;  %s1754_s24 = sphi %s1822_s24, %s2200_s24   ;;  %s1750_s23 = sphi %s1820_s23, %s2199_s23   ;;  %s1746_s22 = sphi %s1818_s22, %s2198_s22   ;;  %s1742_s21 = sphi %s1816_s21, %s2197_s21  }
   0x9   : > { %p47_p0 = scmp.ne.s32.totalorder %s1746_s22, %s1742_s21  ;;  %p2181_p1 = scmp.eq.s32.totalorder %s1837_s25, 0 }
   0xa   : > { %p161_p3 = scmp.eq.s32.totalorder %s1318_s26, 1  ;;  %p1319_p5 = scmp.ge.s32.totalorder %s1754_s24, 1 }
   0xb   : > { %p1846_p4 = por %p2181_p1, %p47_p0  ;;  %p194_p7 = scmp.lt.s32.totalorder %s1754_s24, 3 }
   0xc   : > { %p1851_p6 = por %p161_p3, %p47_p0  ;;  %s1756_s30 = smov [#allocation5]  }
   0xd   : > { %s2184_s27 = scalar_select %p1846_p4, 1, 0 }
   0xe   : > { %s2185_s28 = scalar_select %p1851_p6, 1, 0 }
   0xf   : > { %p1856_p8 = pnand %p1319_p5, %p194_p7  ;;  %s206_s7 = sshll.u32 %s1756_s30, 4  ;;  %s1860_s7 = int_to_ptr.vmem [resolvable:$true] %s206_s7 }
  0x10   : > { %s1757_s9 = smov [#allocation7]   ;;  %s1566_s13 = scalar_lea.hbm %s2175_s1, 512 }
  0x11   : > { %p1472_p9 = pneg %p1856_p8  ;;  %s222_s10 = sshll.u32 %s1757_s9, 4  ;;  %s1871_s10 = int_to_ptr.vmem [resolvable:$true] %s222_s10 }
  0x12   : > { %p1567_p12 = scmp.ne.s32.totalorder %s2175_s1, %s1566_s13  ;;  %p1573_p5 = scmp.lt.u32.totalorder %s1566_s13, %s2175_s1 }
  0x13   : > { %p1867_p11 = pnand %p1472_p9, %p2181_p1 }
  0x15   : > { %p1568_p13 = pneg %p1867_p11 }
  0x17   : > { %p1569_p0 = pnand %p1568_p13, %p1567_p12 }
  0x19   : > { %p1570_p3 = pneg %p1569_p0 }
  0x1b   : > { %p1575_p7 = pnand %p1573_p5, %p1570_p3 }
  0x1d   : > { %1578 = shalt.err (!%p1575_p7)
}
  0x1e   : > { %s1579_s18 = scalar_lea.vmem %s1860_s7, 512  ;;  %p1587_p2 = scmp.lt.s32.totalorder %s1860_s7, %s1860_s7 }
  0x1f   : > { %p1580_p9 = scmp.ne.s32.totalorder %s1860_s7, %s1579_s18  ;;  %p1588_p12 = scmp.lt.s32.totalorder %s1579_s18, %s1579_s18 }
  0x21   : > { %p1582_p10 = pnand %p1580_p9, %p1568_p13  ;;  %p1589_p0 = por %p1588_p12, %p1587_p2 }
  0x23   : > { %p1583_p1 = pneg %p1582_p10 }
  0x25   : > { %p1590_p6 = pnand %p1589_p0, %p1583_p1 }
  0x27   : > { %1593 = shalt.err (!%p1590_p6)
}
  0x28   : > { %s1758_s19 = smov 128   ;;  %s1759_s20 = smov 8  }
  0x29   : > { %1475 = dma.hbm_to_vmem [thread:$0]  (!%p1867_p11), %s2175_s1, 512, %s1860_s7, [#allocation6], %s1758_s19, %s1758_s19, %s1759_s20  }
  0x2a   : > { %s1594_s12 = scalar_lea.hbm %s2177_s3, 512 }
  0x2b   : > { %p1595_p2 = scmp.ne.s32.totalorder %s2177_s3, %s1594_s12  ;;  %p1601_p10 = scmp.lt.u32.totalorder %s1594_s12, %s2177_s3 }
  0x2d   : > { %p1597_p1 = pnand %p1595_p2, %p1568_p13 }
  0x2f   : > { %p1598_p6 = pneg %p1597_p1 }
  0x31   : > { %p1603_p3 = pnand %p1601_p10, %p1598_p6 }
  0x33   : > { %1606 = shalt.err (!%p1603_p3)
}
  0x34   : > { %s1607_s7 = scalar_lea.vmem %s1871_s10, 512  ;;  %p1615_p12 = scmp.lt.s32.totalorder %s1871_s10, %s1871_s10 }
  0x35   : > { %p1608_p5 = scmp.ne.s32.totalorder %s1871_s10, %s1607_s7  ;;  %p1616_p0 = scmp.lt.s32.totalorder %s1607_s7, %s1607_s7 }
  0x37   : > { %p1610_p7 = pnand %p1608_p5, %p1568_p13  ;;  %p1617_p2 = por %p1616_p0, %p1615_p12 }
  0x39   : > { %p1611_p9 = pneg %p1610_p7 }
  0x3b   : > { %p1618_p1 = pnand %p1617_p2, %p1611_p9 }
  0x3d   : > { %1621 = shalt.err (!%p1618_p1)
}
  0x3e   : > { %1478 = dma.hbm_to_vmem [thread:$0]  (!%p1867_p11), %s2177_s3, 512, %s1871_s10, [#allocation6], %s1758_s19, %s1758_s19, %s1759_s20  }
  0x3f   : > { %s1926_s26 = sadd.s32 1, %s1754_s24   ;;  %s34_s8 = sadd.s32 1, %s1750_s23 }
  0x40   : > { %s31_s30 = ssub.s32 %s1754_s24, %s1926_s26  ;;  %p41_p13 = scmp.ne.s32.totalorder %s1750_s23, %s1746_s22 }
  0x41   : > { %p32_p6 = scmp.eq.s32.totalorder %s31_s30, 0  ;;  %p42_p10 = scmp.eq.s32.totalorder %s1754_s24, 0 }
  0x42   : > { %p2188_p3 = scmp.eq.s32.totalorder %s1837_s25, 1  ;;  %p1492_p7 = scmp.lt.s32.totalorder %s1754_s24, 2 }
  0x43   : > { %s1942_s11 = scalar_select %p32_p6, %s1750_s23, %s34_s8  }
  0x44   : > { %p1936_p5 = por %p2188_p3, %p41_p13  ;;  %p43_p9 = por %p42_p10, %p41_p13 }
  0x45   : > { %s239_s12 = sand.u32 1, %s1750_s23   ;;  %s1324_s10 = sshll.u32 %s1754_s24, 7 }
  0x46   : > { %s2189_s9 = scalar_select %p1936_p5, 1, 0 }
  0x47   : > { %s1323_s13 = sshll.u32 %s239_s12, 3  ;;  %s1949_s14 = scalar_lea.hbm %s2174_s0, %s1324_s10 }
  0x48   : > { %s243_s15 = scalar_lea.vmem [#allocation2], %s1323_s13  ;;  %p1953_p11 = pnand %p1492_p7, %p43_p9 }
  0x49   : > { %s250_s16 = sshll.u32 %s243_s15, 4  ;;  %s240_s17 = scalar_lea.sflag [#allocation3], %s239_s12  ;;  %s1951_s16 = int_to_ptr.vmem [resolvable:$true] %s250_s16 }
  0x4a   : > { %s1622_s18 = scalar_lea.hbm %s1949_s14, 128  ;;  %p1624_p0 = pneg %p1953_p11 }
  0x4b   : > { %p1623_p12 = scmp.ne.s32.totalorder %s1949_s14, %s1622_s18  ;;  %s1627_s13 = scalar_lea.hbm %s2174_s0, 256 }
  0x4c   : > { %p1628_p13 = scmp.lt.u32.totalorder %s1949_s14, %s2174_s0  ;;  %p1629_p6 = scmp.lt.u32.totalorder %s1627_s13, %s1622_s18 }
  0x4d   : > { %p1625_p2 = pnand %p1624_p0, %p1623_p12  ;;  %p1631_p3 = scmp.lt.u32.totalorder %s1622_s18, %s1949_s14 }
  0x4e   : > { %p1630_p10 = por %p1629_p6, %p1628_p13 }
  0x4f   : > { %p1626_p1 = pneg %p1625_p2 }
  0x50   : > { %p1632_p7 = por %p1631_p3, %p1630_p10 }
  0x52   : > { %p1633_p9 = pnand %p1632_p7, %p1626_p1 }
  0x54   : > { %1636 = shalt.err (!%p1633_p9)
}
  0x55   : > { %s1637_s12 = scalar_lea.vmem %s1951_s16, 128  ;;  %s1760_s20 = smov [#allocation2]  }
  0x56   : > { %p1638_p12 = scmp.ne.s32.totalorder %s1951_s16, %s1637_s12  ;;  %s1642_s15 = sshll.u32 %s1760_s20, 4  ;;  %s1643_s15 = int_to_ptr.vmem [resolvable:$false] %s1642_s15 }
  0x57   : > { %s1644_s8 = scalar_lea.vmem %s1643_s15, 256  ;;  %p1645_p4 = scmp.lt.s32.totalorder %s1951_s16, %s1643_s15 }
  0x58   : > { %p1640_p2 = pnand %p1638_p12, %p1624_p0  ;;  %p1646_p13 = scmp.lt.s32.totalorder %s1644_s8, %s1637_s12 }
  0x5a   : > { %p1641_p5 = pneg %p1640_p2  ;;  %p1647_p6 = por %p1646_p13, %p1645_p4 }
  0x5c   : > { %p1648_p10 = pnand %p1647_p6, %p1641_p5 }
  0x5e   : > { %1651 = shalt.err (!%p1648_p10)
}
  0x5f   : > { %1482 = dma.hbm_to_vmem [thread:$0]  (!%p1953_p11), %s1949_s14, 128, %s1951_s16, %s240_s17  }
  0x60   : > { %259 = sbr.rel (%p1856_p8) target bundleno = 2109 (0x83d), region = 40  ;;  %s1985_s18 = sand.u32 (!%p1856_p8), 1, %s1746_s22  }
  0x61   : > { %s1326_s30 = sshll.u32 (!%p1856_p8), %s1985_s18, 3  ;;  %s262_s13 = scalar_lea.sflag (!%p1856_p8), [#allocation3], %s1985_s18 }
  0x62   : > { %s265_s10 = scalar_lea.vmem (!%p1856_p8), [#allocation2], %s1326_s30  ;;  %p2191_p4 = scmp.ne.s32.totalorder (!%p1856_p8), %s2184_s27, 0 }
  0x67   : > { %1725 = dma.done.wait (%p2191_p4), %s262_s13, 128  }
  0x68   : > { %1727 = vsyncadd (%p2191_p4), %s262_s13, 4294967168  ;;  %p2192_p5 = scmp.eq.s32.totalorder %s1837_s25, 0 }
  0x6a   : > { %1729 = dma.done.wait (%p2192_p5), [#allocation6], 1024   ;;  %p2193_p8 = pmov %p2192_p5 }
  0x6b   : > { %v1761_v0 = vmov 0.0|0.0   ;;  %vm1762_vm0 = vmmov 0   ;;  %v1763_v1 = vmov 0.0   ;;  %v308_v2 = vld [vmem:[#allocation5] sm:$0xff]  ;;  %v309_v3 = vld [vmem:[#allocation5 + $0x8] sm:$0xff]  ;;  %v310_v4 = vld [vmem:[#allocation5 + $0x10] sm:$0xff] }
  0x6c   : > { %1731 = vsyncadd (%p2193_p8), [#allocation6], 4294966272  ;;  %1446 = vmatprep.subr.bf16.mxu0 %v1761_v0  ;;  %1392 = vmatprep.mubr.msk.f32.mxu0 %vm1762_vm0, %v1763_v1  ;;  %v1447_v5 = vpack.c.bf16 %v309_v3, %v308_v2  ;;  %v311_v6 = vld [vmem:[#allocation5 + $0x18] sm:$0xff]  ;;  %vm319_vm1 = vcmask 261120   ;;  %v1331_v9 = vld [vmem:[%s2176_s2] ss:$0 sm:$0xff] }
  0x6d   : > { %1395 = vmatprep.subr.mxu1 %v1763_v1  ;;  %1397 = vmatprep.mubr.msk.f32.mxu1 %vm1762_vm0, %v1763_v1  ;;  %v1450_v7 = vpack.c.bf16 %v311_v6, %v310_v4  ;;  %v307_v8 = vld [vmem:[%s265_s10] sm:$0xff]  ;;  %s1764_s14 = smov 64   ;;  %s1765_s16 = smov 96   ;;  %vm396_vm2 = vcmask 64512   ;;  %vm1073_vm3 = vcmask 130048   ;;  %vm1075_vm4 = vcmask 195584  }
  0x6e   : > { %1448 = vmatpush3.bf16.msra.mxu0 %v1447_v5  ;;  %s1766_s7 = smov 88   ;;  %s1767_s17 = smov 120  }
  0x6f   : > { %1449 = vmatprep.subr.bf16.mxu0 %v1761_v0  ;;  %s1768_s19 = smov 80   ;;  %s1769_s12 = smov 72  }
  0x70   : > { %s1770_s20 = smov 112   ;;  %s1771_s15 = smov 104  }
  0x71   : > { %s1330_s8 = sshll.u32 %s1985_s18, 5  ;;  %s1772_s10 = smov 56  }
  0x72   : > { %1451 = vmatpush3.bf16.msra.mxu0 %v1450_v7  ;;  %s2043_s13 = scalar_lea.vmem [#allocation9], %s1330_s8  ;;  %s1773_s27 = smov 48  }
  0x73   : > { %1415 = vmatprep.subr.mxu0 %v1763_v1  ;;  %s1774_s29 = smov 40   ;;  %s1168_s8 = scalar_lea.sflag [#allocation10], %s1985_s18 }
  0x74   : > { %p2194_p0 = scmp.ne.s32.totalorder %s2189_s9, 0 }
  0x75   : > { %1393 = vmatmul.mubr.msk.f32.vlgmr.msra.gmra.mrb[0].mxu0 %vm319_vm1, %v307_v8  ;;  %v1077_v8 = vld [vmem:[#allocation7] sm:$0xff] }
  0x76   : > { %1417 = vmatprep.mubr.msk.f32.mxu0 %vm1762_vm0, %v1763_v1 }
 0x148   : > { %v389_v10 = vpop.f32.mrb[0].mxu0 }
 0x149   : > { %v2013_v11 = vadd.f32 %v1331_v9, %v389_v10  ;;  %v1394_v12 = vpop.f32.mrb[1].mxu0  ;;  %v1078_v9 = vld [vmem:[#allocation7 + $0x8] sm:$0xff] }
 0x14a   : > { %v1453_v10 = vpack.c.bf16 %v1078_v9, %v1077_v8  ;;  %v1080_v12 = vld [vmem:[#allocation7 + $0x18] sm:$0xff] }
 0x14b   : > { %483 = vrot.lane.b32.xlu1 %v2013_v11, %s1764_s14  ;;  %394 = vrot.lane.b32.xlu0 %v2013_v11, %s1765_s16  ;;  %s1775_s14 = smov 8   ;;  %s1776_s16 = smov 16  }
 0x14f   : > { %561 = vrot.lane.b32.xlu1 %v2013_v11, %s1766_s7  ;;  %s1777_s7 = smov 24  }
 0x153   : > { %559 = vrot.lane.b32.xlu1 %v2013_v11, %s1767_s17  ;;  %s1357_s17 = sshll.u32 %s1837_s25, 9 }
 0x157   : > { %728 = vrot.lane.b32.xlu1 %v2013_v11, %s1768_s19  ;;  %s1194_s19 = sshll.u32 %s2043_s13, 4  ;;  %s2093_s19 = int_to_ptr.vmem [resolvable:$true] %s1194_s19 }
 0x1bd   : > { %v484_v13 = vpop.permute.xlu1 %483  ;;  %v395_v14 = vpop.permute.xlu0 %394 }
 0x1be   : > { %1396 = vmatpush3.xpose.msk.msra.mxu1 %vm396_vm2, %v395_v14 }
 0x1bf   : > { %1400 = vmatprep.subr.mxu1 %v1763_v1 }
 0x1c1   : > { %v562_v15 = vpop.permute.xlu1 %561  ;;  %1398 = vmatmul.mubr.msk.f32.vlgmr.msra.gmra.mrb[0].mxu1 %vm396_vm2, %v2013_v11 }
 0x1c2   : > { %1401 = vmatpush3.msra.mxu1 %v484_v13  ;;  %1402 = vmatprep.mubr.msk.f32.mxu1 %vm1762_vm0, %v1763_v1 }
 0x1c3   : > { %1405 = vmatprep.subr.mxu1 %v1763_v1 }
 0x1c5   : > { %v560_v16 = vpop.permute.xlu1 %559 }
 0x1c9   : > { %v729_v17 = vpop.permute.xlu1 %728 }
 0x1ca   : > { %1416 = vmatpush3.xpose.msk.msra.mxu0 %vm396_vm2, %v729_v17 }
 0x1cb   : > { %1425 = vmatprep.subr.mxu0 %v1763_v1 }
 0x294   : > { %v467_v18 = vpop.f32.mrb[0].mxu1 }
 0x295   : > { %v1399_v19 = vpop.f32.mrb[1].mxu1  ;;  %v471_v20 = vsel %vm396_vm2, %v467_v18, -inf }
 0x296   : > { %472 = vmax.xlane.f32.xlu0 %v471_v20 }
 0x2ac   : > { %895 = vrot.lane.b32.xlu0 %v2013_v11, %s1769_s12 }
 0x323   : > { %v473_v21 = vpop.xlane.xlu0 %472 }
 0x324   : > { %v474_v22 = vsub.f32 %v467_v18, %v473_v21 }
 0x326   : > { %v475_v23 = vmul.f32 1.442695, %v474_v22 }
 0x327   : > { %v896_v28 = vpop.permute.xlu0 %895 }
 0x328   : > { %1550 = vpow2.f32 %v475_v23 }
 0x332   : > { %v1551_v24 = vpop.eup %1550 }
 0x333   : > { %v477_v25 = vsel %vm396_vm2, %v1551_v24, 0.0 }
 0x334   : > { %478 = vadd.xlane.f32.xlu1 %v477_v25 }
 0x345   : > { %726 = vrot.lane.b32.xlu1 %v2013_v11, %s1770_s20 }
 0x349   : > { %893 = vrot.lane.b32.xlu1 %v2013_v11, %s1771_s15  ;;  %s2091_s15 = scalar_lea.hbm %s2180_s6, %s1357_s17 }
 0x3c1   : > { %v479_v26 = vpop.xlane.xlu1 %478 }
 0x3c2   : > { %1552 = vrcp.f32 %v479_v26 }
 0x3c5   : > { %v727_v27 = vpop.permute.xlu1 %726 }
 0x3c6   : > { %1418 = vmatmul.mubr.msk.f32.vlgmr.msra.gmra.mrb[2].mxu0 %vm396_vm2, %v727_v27 }
 0x3c7   : > { %1426 = vmatpush3.xpose.msk.msra.mxu0 %vm396_vm2, %v896_v28  ;;  %1427 = vmatprep.mubr.msk.f32.mxu0 %vm1762_vm0, %v1763_v1 }
 0x3c8   : > { %1452 = vmatprep.subr.bf16.mxu0 %v1761_v0 }
 0x3c9   : > { %v894_v29 = vpop.permute.xlu1 %893 }
 0x3ca   : > { %1428 = vmatmul.mubr.msk.f32.vlgmr.msra.gmra.mrb[4].mxu0 %vm396_vm2, %v894_v29 }
 0x3cb   : > { %1443 = vmatprep.mubr.msk.f32.mxu0 %vm1762_vm0, %v1763_v1  ;;  %1454 = vmatpush3.bf16.msra.mxu0 %v1453_v10 }
 0x3cc   : > { %v1553_v30 = vpop.eup %1552  ;;  %1455 = vmatprep.subr.bf16.mxu0 %v1761_v0 }
 0x3cd   : > { %v481_v31 = vmul.f32 %v1553_v30, %v1551_v24 }
 0x3cf   : > { %482 = vst.msk [vmem:[%s2043_s13] sm:$0xff] %vm396_vm2, %v481_v31  ;;  %1403 = vmatmul.mubr.msk.f32.vlgmr.msra.gmra.mrb[2].mxu1 %vm396_vm2, %v481_v31 }
 0x3d0   : > { %1406 = vmatpush3.xpose.msk.msra.mxu1 %vm396_vm2, %v562_v15  ;;  %1407 = vmatprep.mubr.msk.f32.mxu1 %vm1762_vm0, %v1763_v1 }
 0x3d1   : > { %1410 = vmatprep.subr.mxu1 %v1763_v1 }
 0x3d3   : > { %1408 = vmatmul.mubr.msk.f32.vlgmr.msra.gmra.mrb[4].mxu1 %vm396_vm2, %v560_v16 }
 0x3d4   : > { %1412 = vmatprep.mubr.msk.f32.mxu1 %vm1762_vm0, %v1763_v1 }
 0x499   : > { %v800_v32 = vpop.f32.mrb[2].mxu0 }
 0x49a   : > { %v1419_v33 = vpop.f32.mrb[3].mxu0  ;;  %v804_v34 = vsel %vm396_vm2, %v800_v32, -inf }
 0x49b   : > { %805 = vmax.xlane.f32.xlu0 %v804_v34 }
 0x49d   : > { %v967_v35 = vpop.f32.mrb[4].mxu0 }
 0x49e   : > { %v1429_v36 = vpop.f32.mrb[5].mxu0  ;;  %v971_v42 = vsel %vm396_vm2, %v967_v35, -inf }
 0x4a2   : > { %v2056_v37 = vpop.f32.mrb[2].mxu1 }
 0x4a3   : > { %v1404_v38 = vpop.f32.mrb[3].mxu1 }
 0x4a6   : > { %v633_v39 = vpop.f32.mrb[4].mxu1 }
 0x4a7   : > { %v1409_v40 = vpop.f32.mrb[5].mxu1  ;;  %v637_v41 = vsel %vm396_vm2, %v633_v39, -inf }
 0x4a8   : > { %638 = vmax.xlane.f32.xlu1 %v637_v41 }
 0x4ac   : > { %972 = vmax.xlane.f32.xlu1 %v971_v42 }
 0x528   : > { %v806_v43 = vpop.xlane.xlu0 %805 }
 0x529   : > { %v807_v44 = vsub.f32 %v800_v32, %v806_v43 }
 0x52b   : > { %v808_v45 = vmul.f32 1.442695, %v807_v44 }
 0x52d   : > { %1554 = vpow2.f32 %v808_v45 }
 0x535   : > { %v639_v46 = vpop.xlane.xlu1 %638 }
 0x536   : > { %v640_v54 = vsub.f32 %v633_v39, %v639_v46 }
 0x537   : > { %v1555_v47 = vpop.eup %1554 }
 0x538   : > { %v810_v48 = vsel %vm396_vm2, %v1555_v47, 0.0  ;;  %v641_v55 = vmul.f32 1.442695, %v640_v54 }
 0x539   : > { %811 = vadd.xlane.f32.xlu1 %v810_v48  ;;  %v973_v49 = vpop.xlane.xlu1 %972 }
 0x53a   : > { %v974_v50 = vsub.f32 %v967_v35, %v973_v49 }
 0x53c   : > { %v975_v51 = vmul.f32 1.442695, %v974_v50 }
 0x53e   : > { %1556 = vpow2.f32 %v975_v51 }
 0x53f   : > { %1558 = vpow2.f32 %v641_v55 }
 0x548   : > { %v1557_v52 = vpop.eup %1556 }
 0x549   : > { %v977_v53 = vsel %vm396_vm2, %v1557_v52, 0.0  ;;  %v1559_v56 = vpop.eup %1558 }
 0x54a   : > { %650 = vrot.lane.b32.xlu1 %v2013_v11, %s1772_s10  ;;  %978 = vadd.xlane.f32.xlu0 %v977_v53  ;;  %v643_v57 = vsel %vm396_vm2, %v1559_v56, 0.0  ;;  %s1652_s10 = scalar_lea.vmem %s2093_s19, 512 }
 0x54b   : > { %p1653_p11 = scmp.ne.s32.totalorder %s2093_s19, %s1652_s10 }
 0x54d   : > { %p1654_p1 = pnand %p1653_p11, %p2194_p0 }
 0x54f   : > { %p1655_p3 = pneg %p1654_p1 }
 0x560   : > { %817 = vrot.lane.b32.xlu0 %v2013_v11, %s1773_s27  ;;  %s1778_s27 = smov [#allocation9]  }
 0x56e   : > { %644 = vadd.xlane.f32.xlu1 %v643_v57 }
 0x57f   : > { %984 = vrot.lane.b32.xlu1 %v2013_v11, %s1774_s29  ;;  %v1079_v11 = vld [vmem:[#allocation7 + $0x10] sm:$0xff]  ;;  %s1656_s29 = sshll.u32 %s1778_s27, 4  ;;  %s1657_s29 = int_to_ptr.vmem [resolvable:$false] %s1656_s29 }
 0x580   : > { %v1456_v13 = vpack.c.bf16 %v1080_v12, %v1079_v11  ;;  %p1659_p7 = scmp.lt.s32.totalorder %s2093_s19, %s1657_s29 }
 0x582   : > { %1457 = vmatpush3.bf16.msra.mxu0 %v1456_v13 }
 0x5c6   : > { %v812_v58 = vpop.xlane.xlu1 %811 }
 0x5c7   : > { %1560 = vrcp.f32 %v812_v58 }
 0x5ca   : > { %v651_v59 = vpop.permute.xlu1 %650 }
 0x5cb   : > { %1411 = vmatpush3.msra.mxu1 %v651_v59 }
 0x5cc   : > { %1420 = vmatprep.subr.mxu1 %v1763_v1 }
 0x5d1   : > { %v1561_v60 = vpop.eup %1560 }
 0x5d2   : > { %v814_v61 = vmul.f32 %v1561_v60, %v1555_v47 }
 0x5d4   : > { %1342 = vst.msk [vmem:[%s2043_s13 + $0x10] sm:$0xff] %vm396_vm2, %v814_v61 }
 0x5d7   : > { %v979_v62 = vpop.xlane.xlu0 %978 }
 0x5d8   : > { %1562 = vrcp.f32 %v979_v62 }
 0x5db   : > { %v818_v6 = vpop.permute.xlu0 %817 }
 0x5e2   : > { %v1563_v63 = vpop.eup %1562 }
 0x5e3   : > { %v981_v2 = vmul.f32 %v1563_v63, %v1557_v52 }
 0x5e5   : > { %1346 = vst.msk [vmem:[%s2043_s13 + $0x18] sm:$0xff] %vm396_vm2, %v981_v2 }
 0x5fb   : > { %v645_v3 = vpop.xlane.xlu1 %644 }
 0x5fc   : > { %1564 = vrcp.f32 %v645_v3 }
 0x5ff   : > { %v985_v7 = vpop.permute.xlu1 %984 }
 0x606   : > { %v1565_v4 = vpop.eup %1564 }
 0x607   : > { %v647_v5 = vmul.f32 %v1565_v4, %v1559_v56 }
 0x609   : > { %1338 = vst.msk [vmem:[%s2043_s13 + $0x8] sm:$0xff] %vm396_vm2, %v647_v5  ;;  %1413 = vmatmul.mubr.msk.f32.vlgmr.msra.gmra.mrb[6].mxu1 %vm396_vm2, %v647_v5  ;;  %s1658_s13 = scalar_lea.vmem %s1657_s29, 1024 }
 0x60a   : > { %1421 = vmatpush3.msra.mxu1 %v818_v6  ;;  %1422 = vmatprep.mubr.msk.f32.mxu1 %vm1762_vm0, %v1763_v1  ;;  %p1660_p9 = scmp.lt.s32.totalorder %s1658_s13, %s1652_s10 }
 0x60b   : > { %1430 = vmatprep.subr.mxu1 %v1763_v1 }
 0x60c   : > { %p1661_p12 = por %p1660_p9, %p1659_p7 }
 0x60d   : > { %1423 = vmatmul.mubr.msk.f32.vlgmr.msra.gmra.mrb[8].mxu1 %vm396_vm2, %v814_v61 }
 0x60e   : > { %1431 = vmatpush3.msra.mxu1 %v985_v7  ;;  %1432 = vmatprep.mubr.msk.f32.mxu1 %vm1762_vm0, %v1763_v1  ;;  %p1662_p2 = pnand %p1661_p12, %p1655_p3 }
 0x611   : > { %1433 = vmatmul.mubr.msk.f32.vlgmr.msra.gmra.mrb[10].mxu1 %vm396_vm2, %v981_v2 }
 0x6dc   : > { %v722_v14 = vpop.f32.mrb[6].mxu1 }
 0x6dd   : > { %1061 = vrot.lane.b32.xlu1 %v722_v14, %s1775_s14  ;;  %v1414_v15 = vpop.f32.mrb[7].mxu1 }
 0x6e0   : > { %v889_v16 = vpop.f32.mrb[8].mxu1 }
 0x6e1   : > { %1065 = vrot.lane.b32.xlu0 %v889_v16, %s1776_s16  ;;  %v1424_v1 = vpop.f32.mrb[9].mxu1 }
 0x6e4   : > { %v1056_v17 = vpop.f32.mrb[10].mxu1 }
 0x6e5   : > { %1069 = vrot.lane.b32.xlu1 %v1056_v17, %s1777_s7  ;;  %v1434_v0 = vpop.f32.mrb[11].mxu1 }
 0x74f   : > { %v1062_v18 = vpop.permute.xlu1 %1061 }
 0x750   : > { %v1072_v20 = vsel %vm396_vm2, %v2056_v37, %v1062_v18 }
 0x753   : > { %v1066_v19 = vpop.permute.xlu0 %1065 }
 0x754   : > { %v1074_v21 = vsel %vm1073_vm3, %v1072_v20, %v1066_v19 }
 0x757   : > { %v1070_v22 = vpop.permute.xlu1 %1069 }
 0x758   : > { %v1076_v23 = vsel %vm1075_vm4, %v1074_v21, %v1070_v22 }
 0x759   : > { %1444 = vmatmul.mubr.msk.f32.vlgmr.msra.gmra.mrb[6].mxu0 %vm319_vm1, %v1076_v23 }
 0x75a   : > { %1665 = shalt.err (!%p1662_p2)
}
 0x75b   : > { %s1666_s16 = scalar_lea.hbm %s2091_s15, 512  ;;  %s1670_s12 = scalar_lea.hbm %s2180_s6, 1024 }
 0x75c   : > { %p1667_p13 = scmp.ne.s32.totalorder %s2091_s15, %s1666_s16  ;;  %p1671_p4 = scmp.lt.u32.totalorder %s2091_s15, %s2180_s6 }
 0x75d   : > { %p1672_p5 = scmp.lt.u32.totalorder %s1670_s12, %s1666_s16  ;;  %p1674_p11 = scmp.lt.u32.totalorder %s1666_s16, %s2091_s15 }
 0x75e   : > { %p1668_p6 = pnand %p1667_p13, %p2194_p0 }
 0x75f   : > { %p1673_p8 = por %p1672_p5, %p1671_p4 }
 0x760   : > { %p1669_p10 = pneg %p1668_p6 }
 0x761   : > { %p1675_p1 = por %p1674_p11, %p1673_p8 }
 0x763   : > { %p1676_p3 = pnand %p1675_p1, %p1669_p10 }
 0x765   : > { %1679 = shalt.err (!%p1676_p3)
}
 0x766   : > { %s1779_s10 = smov 128   ;;  %v1348_v24 = vld [vmem:[%s2178_s4] ss:$0 sm:$0xff]  ;;  %s1352_s16 = sshll.u32 %s1837_s25, 7 }
 0x767   : > { %1469 = dma.vmem_to_hbm [thread:$0]  (%p2194_p0), %s2093_s19, 512, %s2091_s15, %s1168_s8, %s1779_s10, %s1779_s10, %s1775_s14  }
 0x768   : > { %s299_s7 = scalar_lea.vmem [#allocation8], %s1326_s30  ;;  %s2129_s27 = scalar_lea.hbm %s2179_s5, %s1352_s16 }
 0x769   : > { %s1181_s17 = sshll.u32 %s299_s7, 4  ;;  %s1163_s14 = scalar_lea.sflag [#allocation4], %s1985_s18  ;;  %s2131_s17 = int_to_ptr.vmem [resolvable:$true] %s1181_s17 }
 0x76a   : > { %s1680_s25 = scalar_lea.vmem %s2131_s17, 128  ;;  %s1780_s30 = smov [#allocation8]  }
 0x76b   : > { %p1681_p7 = scmp.ne.s32.totalorder %s2131_s17, %s1680_s25  ;;  %s1684_s19 = sshll.u32 %s1780_s30, 4  ;;  %s1685_s19 = int_to_ptr.vmem [resolvable:$false] %s1684_s19 }
 0x76c   : > { %s1686_s15 = scalar_lea.vmem %s1685_s19, 256  ;;  %p1687_p2 = scmp.lt.s32.totalorder %s2131_s17, %s1685_s19 }
 0x76d   : > { %p1682_p9 = pnand %p1681_p7, %p2194_p0  ;;  %p1688_p13 = scmp.lt.s32.totalorder %s1686_s15, %s1680_s25 }
 0x76f   : > { %p1683_p12 = pneg %p1682_p9  ;;  %p1689_p6 = por %p1688_p13, %p1687_p2 }
 0x771   : > { %p1690_p10 = pnand %p1689_p6, %p1683_p12 }
 0x82c   : > { %v1157_v25 = vpop.f32.mrb[6].mxu0 }
 0x82d   : > { %v1158_v26 = vadd.f32 %v1348_v24, %v1157_v25  ;;  %v1445_v27 = vpop.f32.mrb[7].mxu0 }
 0x82f   : > { %1161 = vst.msk [vmem:[%s299_s7] sm:$0xff] %vm319_vm1, %v1158_v26 }
 0x830   : > { %1693 = shalt.err (!%p1690_p10)
}
 0x831   : > { %s1694_s18 = scalar_lea.hbm %s2129_s27, 128  ;;  %s1698_s29 = scalar_lea.hbm %s2179_s5, 256 }
 0x832   : > { %p1695_p4 = scmp.ne.s32.totalorder %s2129_s27, %s1694_s18  ;;  %p1699_p11 = scmp.lt.u32.totalorder %s2129_s27, %s2179_s5 }
 0x833   : > { %p1700_p1 = scmp.lt.u32.totalorder %s1698_s29, %s1694_s18  ;;  %p1702_p7 = scmp.lt.u32.totalorder %s1694_s18, %s2129_s27 }
 0x834   : > { %p1696_p5 = pnand %p1695_p4, %p2194_p0 }
 0x835   : > { %p1701_p3 = por %p1700_p1, %p1699_p11 }
 0x836   : > { %p1697_p8 = pneg %p1696_p5 }
 0x837   : > { %p1703_p9 = por %p1702_p7, %p1701_p3 }
 0x839   : > { %p1704_p12 = pnand %p1703_p9, %p1697_p8 }
 0x83b   : > { %1707 = shalt.err (!%p1704_p12)
}
 0x83c   : > { %1468 = dma.vmem_to_hbm [thread:$0]  (%p2194_p0), %s2131_s17, 128, %s2129_s27, %s1163_s14  }
 0x83d PF: > { %s1209_s7 = sand.u32 1, %s1742_s21   ;;  %p2195_p2 = scmp.ne.s32.totalorder %s2185_s28, 0 }
 0x83e   : > { %p2196_p13 = scmp.ge.s32.totalorder %s1754_s24, 2  ;;  %s1210_s12 = scalar_lea.sflag [#allocation4], %s1209_s7 }
 0x840   : > { %p1484_p6 = pnand %p2196_p13, %p2195_p2 }
 0x842   : > { %1733 = dma.done.wait (!%p1484_p6), %s1210_s12, 128  }
 0x843   : > { %1735 = vsyncadd (!%p1484_p6), %s1210_s12, 4294967168  ;;  %s1219_s20 = scalar_lea.sflag [#allocation10], %s1209_s7 }
 0x844   : > { %1737 = dma.done.wait (!%p1484_p6), %s1219_s20, 512  }
 0x845   : > { %1739 = vsyncadd (!%p1484_p6), %s1219_s20, 4294966784  ;;  %p24_p0 = scmp.ge.s32.totalorder %s1926_s26, 4   ;;  %s2197_s21 = smov %s1746_s22 }
 0x846   : > { %s2198_s22 = smov %s1750_s23  ;;  %s2199_s23 = smov %s1942_s11 }
 0x847   : > { %s2200_s24 = smov %s1926_s26  ;;  %26 = sbr.rel (!%p24_p0) target bundleno = 8 (0x8), region = 113 }
 0x84e   :  { %1224 = vsyncpa [#allocation3], 1 }
 0x84f   :  { %1226 = vsyncpa [#allocation3 + $0x1], 1 }
 0x850   :  { %1227 = vsyncpa [#allocation6], 1 }
 0x851   :  { %1228 = vsyncpa [#allocation4], 1 }
 0x852   :  { %1230 = vsyncpa [#allocation4 + $0x1], 1 }
 0x853   :  { %1231 = vsyncpa [#allocation10], 1 }
 0x854   :  { %1233 = vsyncpa [#allocation10 + $0x1], 1 }

</bundles_post_ra>
